<compile_context>
chip_gen: v7x
topology: tpu7x:2x2x1
jax: 0.10.0
libtpu: 0.0.40
codegen_flags: <defaults>
</compile_context>

<pallas_src>
import functools

import jax
import jax.numpy as jnp
from jax.experimental import pallas as pl
from jax.experimental.pallas import tpu as pltpu


def _mha_kernel(q_ref, k_ref, v_ref,
                wq_ref, wk_ref, wv_ref, wp_ref, bias_ref,
                o_ref, *, num_heads):
    """One (batch, query-tile) grid step: batched-over-heads fused attention."""
    H = num_heads
    q = q_ref[...]          # (Tq, Dq)  bf16
    k = k_ref[...]          # (M,  Dk)  bf16
    v = v_ref[...]          # (M,  Dv)  bf16

    # Heads as a leading batch dim: broadcast activations once (cheap, leading dim).
    qb = jnp.broadcast_to(q[None], (H,) + q.shape)      # (H, Tq, Dq)
    kb = jnp.broadcast_to(k[None], (H,) + k.shape)      # (H, M,  Dk)
    vb = jnp.broadcast_to(v[None], (H,) + v.shape)      # (H, M,  Dv)

    # Per-head projections as batched matmuls (scale folded into wq by the wrapper).
    qh = jnp.einsum('hnd,hds->hns', qb, wq_ref[...],
                    preferred_element_type=jnp.float32)  # (H, Tq, S) f32
    kh = jnp.einsum('hmd,hds->hms', kb, wk_ref[...],
                    preferred_element_type=jnp.float32)  # (H, M,  S) f32
    vh = jnp.einsum('hmd,hds->hms', vb, wv_ref[...],
                    preferred_element_type=jnp.float32)  # (H, M,  S) f32

    # Attention logits: one batched contraction over heads (no per-head lane slices).
    logits = jnp.einsum('hns,hms->hnm',
                        qh.astype(jnp.bfloat16), kh.astype(jnp.bfloat16),
                        preferred_element_type=jnp.float32)      # (H, Tq, M)

    # Numerically-stable softmax along the key axis, all f32 math.
    logits = logits - jnp.max(logits, axis=-1, keepdims=True)
    p = jnp.exp(logits)
    denom = jnp.sum(p, axis=-1, keepdims=True)
    inv = pl.reciprocal(denom, approx=True)          # EUP slot (co-issues)
    inv = inv * (2.0 - denom * inv)                  # one Newton step -> ~f32-exact
    attn = p * inv                                   # (H, Tq, M) f32

    # attn @ v, then per-head output projection, summed over heads.
    mo = jnp.einsum('hnm,hms->hns',
                    attn.astype(jnp.bfloat16), vh.astype(jnp.bfloat16),
                    preferred_element_type=jnp.float32)          # (H, Tq, S)
    out_h = jnp.einsum('hns,hso->hno',
                       mo.astype(jnp.bfloat16), wp_ref[...],
                       preferred_element_type=jnp.float32)       # (H, Tq, O)
    out = jnp.sum(out_h, axis=0) + bias_ref[...]                 # (Tq, O) f32
    o_ref[...] = out.astype(o_ref.dtype)


def multi_head_attention(query, key, value, wq, wk, wv, wp, bias, *, q_tile=None):
    """Pallas MHA forward.

    query: (B, N, Dq), key: (B, M, Dk), value: (B, M, Dv)
    wq: (H, Dq, S), wk: (H, Dk, S), wv: (H, Dv, S), wp: (H, S, O), bias: (O,)
    returns (B, N, O) in query.dtype
    """
    B, N, Dq = query.shape
    _, M, Dk = key.shape
    _, _, Dv = value.shape
    H, _, S = wq.shape
    O = wp.shape[-1]
    out_dtype = query.dtype

    if q_tile is None:
        q_tile = N if N <= 128 else 128
    assert N % q_tile == 0, (N, q_tile)

    # bf16 MXU operands (halves HBM bytes; MXU peak is bf16 on v6e/v7x).
    # Fold 1/sqrt(head_size) into Wq in f32, then a single bf16 rounding.
    scale = 1.0 / jnp.sqrt(jnp.float32(S))
    wq_b = (wq.astype(jnp.float32) * scale).astype(jnp.bfloat16)
    wk_b = wk.astype(jnp.bfloat16)
    wv_b = wv.astype(jnp.bfloat16)
    wp_b = wp.astype(jnp.bfloat16)
    bias2d = bias.reshape(1, O).astype(jnp.float32)

    q_b = query.astype(jnp.bfloat16)
    k_b = key.astype(jnp.bfloat16)
    v_b = value.astype(jnp.bfloat16)

    kernel = functools.partial(_mha_kernel, num_heads=H)
    grid = (B, N // q_tile)

    return pl.pallas_call(
        kernel,
        out_shape=jax.ShapeDtypeStruct((B, N, O), out_dtype),
        grid_spec=pltpu.PrefetchScalarGridSpec(
            num_scalar_prefetch=0,
            grid=grid,
            in_specs=[
                # activations: batch dim squeezed, query tiled along grid axis 1
                pl.BlockSpec((pl.Squeezed(), q_tile, Dq), lambda b, qt: (b, qt, 0)),
                pl.BlockSpec((pl.Squeezed(), M, Dk), lambda b, qt: (b, 0, 0)),
                pl.BlockSpec((pl.Squeezed(), M, Dv), lambda b, qt: (b, 0, 0)),
                # weights/bias: constant block index -> DMA'd once, VMEM-resident
                pl.BlockSpec((H, Dq, S), lambda b, qt: (0, 0, 0)),   # query_kernel (scaled)
                pl.BlockSpec((H, Dk, S), lambda b, qt: (0, 0, 0)),   # key_kernel
                pl.BlockSpec((H, Dv, S), lambda b, qt: (0, 0, 0)),   # value_kernel
                pl.BlockSpec((H, S, O), lambda b, qt: (0, 0, 0)),    # projection_kernel
                pl.BlockSpec((1, O), lambda b, qt: (0, 0)),          # projection_bias
            ],
            out_specs=pl.BlockSpec((pl.Squeezed(), q_tile, O),
                                   lambda b, qt: (b, qt, 0)),
        ),
        compiler_params=pltpu.CompilerParams(
            dimension_semantics=("parallel", "parallel")),
    )(q_b, k_b, v_b, wq_b, wk_b, wv_b, wp_b, bias2d)


def _xavier_uniform(key, shape, dtype=jnp.float32):
    # PyTorch xavier_uniform_ for a 3D tensor [H, I, O]:
    #   fan_in = I * O, fan_out = H * O  (receptive field = trailing dims)
    h, i, o = shape
    fan_in, fan_out = i * o, h * o
    bound = jnp.sqrt(6.0 / (fan_in + fan_out))
    return jax.random.uniform(key, shape, dtype, minval=-bound, maxval=bound)


def _reference(query, key, value, wq, wk, wv, wp, bias):
    """Plain-JAX f32 transcription of the PyTorch forward (for verification)."""
    q = jnp.einsum('bni,hio->bnho', query, wq) / jnp.sqrt(jnp.float32(wq.shape[-1]))
    k = jnp.einsum('bmi,hio->bmho', key, wk)
    v = jnp.einsum('bmi,hio->bmho', value, wv)
    logits = jnp.einsum('bnho,bmho->bhnm', q, k)
    attn = jax.nn.softmax(logits, axis=-1)
    mo = jnp.einsum('bhnm,bmhi->bnhi', attn, v)
    return jnp.einsum('bnhi,hio->bno', mo, wp) + bias


if __name__ == "__main__":
    # Config (mirrors MultiHeadAttention(input_channels=(8, 8, 8), head_size=16, num_heads=4))
    B, N, M = 2, 8, 16
    Dq = Dk = Dv = 8          # module's value_kernel uses num_key_features -> Dv == Dk
    H, S = 4, 16
    O = Dv                    # output_size=None -> value depth

    root = jax.random.PRNGKey(0)
    kq, kk, kv, kwq, kwk, kwv, kwp = jax.random.split(root, 7)

    query = jax.random.normal(kq, (B, N, Dq), jnp.float32)
    key = jax.random.normal(kk, (B, M, Dk), jnp.float32)
    value = jax.random.normal(kv, (B, M, Dv), jnp.float32)

    wq = _xavier_uniform(kwq, (H, Dq, S))
    wk = _xavier_uniform(kwk, (H, Dk, S))
    wv = _xavier_uniform(kwv, (H, Dv, S))
    wp = _xavier_uniform(kwp, (H, S, O))
    bias = jnp.zeros((O,), jnp.float32)   # nn.Parameter(torch.zeros([output_size]))

    out = multi_head_attention(query, key, value, wq, wk, wv, wp, bias)
    out = jax.block_until_ready(out)

    ref = _reference(query, key, value, wq, wk, wv, wp, bias)
    assert out.shape == (B, N, O), out.shape
    # Tolerance accounts for bf16 MXU operands (f32 accumulation, f32 softmax).
    assert jnp.allclose(out, ref, atol=2e-2, rtol=2e-2), float(jnp.max(jnp.abs(out - ref)))

    print("KERNEL_OK")
</pallas_src>

<mosaic_0001>
module attributes {stable_mosaic.version = 11 : i64} {
  func.func @_mha_kernel(%arg0: i32, %arg1: i32, %arg2: memref<1x8x8xbf16, #tpu.memory_space<vmem>>, %arg3: memref<1x16x8xbf16, #tpu.memory_space<vmem>>, %arg4: memref<1x16x8xbf16, #tpu.memory_space<vmem>>, %arg5: memref<4x8x16xbf16, #tpu.memory_space<vmem>>, %arg6: memref<4x8x16xbf16, #tpu.memory_space<vmem>>, %arg7: memref<4x8x16xbf16, #tpu.memory_space<vmem>>, %arg8: memref<4x16x8xbf16, #tpu.memory_space<vmem>>, %arg9: memref<1x8xf32, #tpu.memory_space<vmem>>, %arg10: memref<1x8x8xf32, #tpu.memory_space<vmem>>) attributes {dimension_semantics = [#tpu.dimension_semantics<parallel>, #tpu.dimension_semantics<parallel>], iteration_bounds = array<i64: 2, 1>, scalar_prefetch = 0 : i64, scratch_operands = 0 : i64, tpu.core_type = #tpu.core_type<tc>, window_params = [{transform_indices = @transform_0, window_bounds = array<i64: 1, 8, 8>}, {transform_indices = @transform_1, window_bounds = array<i64: 1, 16, 8>}, {transform_indices = @transform_2, window_bounds = array<i64: 1, 16, 8>}, {pipeline_mode = #tpu.pipeline_mode<synchronous>, transform_indices = @transform_3, window_bounds = array<i64: 4, 8, 16>}, {pipeline_mode = #tpu.pipeline_mode<synchronous>, transform_indices = @transform_4, window_bounds = array<i64: 4, 8, 16>}, {pipeline_mode = #tpu.pipeline_mode<synchronous>, transform_indices = @transform_5, window_bounds = array<i64: 4, 8, 16>}, {pipeline_mode = #tpu.pipeline_mode<synchronous>, transform_indices = @transform_6, window_bounds = array<i64: 4, 16, 8>}, {pipeline_mode = #tpu.pipeline_mode<synchronous>, transform_indices = @transform_7, window_bounds = array<i64: 1, 8>}, {transform_indices = @transform_8, window_bounds = array<i64: 1, 8, 8>}]} {
    %c0 = arith.constant 0 : index
    %c0_0 = arith.constant 0 : index
    %c0_1 = arith.constant 0 : index
    %0 = vector.load %arg2[%c0, %c0_0, %c0_1] : memref<1x8x8xbf16, #tpu.memory_space<vmem>>, vector<1x8x8xbf16>
    %1 = vector.shape_cast %0 : vector<1x8x8xbf16> to vector<8x8xbf16>
    %c0_2 = arith.constant 0 : index
    %c0_3 = arith.constant 0 : index
    %c0_4 = arith.constant 0 : index
    %2 = vector.load %arg3[%c0_2, %c0_3, %c0_4] : memref<1x16x8xbf16, #tpu.memory_space<vmem>>, vector<1x16x8xbf16>
    %3 = vector.shape_cast %2 : vector<1x16x8xbf16> to vector<16x8xbf16>
    %c0_5 = arith.constant 0 : index
    %c0_6 = arith.constant 0 : index
    %c0_7 = arith.constant 0 : index
    %4 = vector.load %arg4[%c0_5, %c0_6, %c0_7] : memref<1x16x8xbf16, #tpu.memory_space<vmem>>, vector<1x16x8xbf16>
    %5 = vector.shape_cast %4 : vector<1x16x8xbf16> to vector<16x8xbf16>
    %6 = vector.shape_cast %1 : vector<8x8xbf16> to vector<1x8x8xbf16>
    %7 = vector.shape_cast %6 : vector<1x8x8xbf16> to vector<1x8x8xbf16>
    %8 = vector.broadcast %7 : vector<1x8x8xbf16> to vector<4x8x8xbf16>
    %9 = vector.shape_cast %3 : vector<16x8xbf16> to vector<1x16x8xbf16>
    %10 = vector.shape_cast %9 : vector<1x16x8xbf16> to vector<1x16x8xbf16>
    %11 = vector.broadcast %10 : vector<1x16x8xbf16> to vector<4x16x8xbf16>
    %12 = vector.shape_cast %5 : vector<16x8xbf16> to vector<1x16x8xbf16>
    %13 = vector.shape_cast %12 : vector<1x16x8xbf16> to vector<1x16x8xbf16>
    %14 = vector.broadcast %13 : vector<1x16x8xbf16> to vector<4x16x8xbf16>
    %c0_8 = arith.constant 0 : index
    %c0_9 = arith.constant 0 : index
    %c0_10 = arith.constant 0 : index
    %15 = vector.load %arg5[%c0_8, %c0_9, %c0_10] : memref<4x8x16xbf16, #tpu.memory_space<vmem>>, vector<4x8x16xbf16>
    "tpu.trace_start"() <{level = 10 : i32, message = "hnd,hds->hns"}> : () -> ()
    %cst = arith.constant dense<0.000000e+00> : vector<4x8x16xf32>
    %16 = tpu.matmul %8, %15, %cst {dimension_numbers = #tpu.dot_dimension_numbers<[2], [1], [1], [2], [0, 0, 0, 1, 1, 2], [0], [0]>} : vector<4x8x8xbf16>, vector<4x8x16xbf16>, vector<4x8x16xf32> -> vector<4x8x16xf32>
    "tpu.trace_stop"() : () -> ()
    %c0_11 = arith.constant 0 : index
    %c0_12 = arith.constant 0 : index
    %c0_13 = arith.constant 0 : index
    %17 = vector.load %arg6[%c0_11, %c0_12, %c0_13] : memref<4x8x16xbf16, #tpu.memory_space<vmem>>, vector<4x8x16xbf16>
    "tpu.trace_start"() <{level = 10 : i32, message = "hmd,hds->hms"}> : () -> ()
    %cst_14 = arith.constant dense<0.000000e+00> : vector<4x16x16xf32>
    %18 = tpu.matmul %11, %17, %cst_14 {dimension_numbers = #tpu.dot_dimension_numbers<[2], [1], [1], [2], [0, 0, 0, 1, 1, 2], [0], [0]>} : vector<4x16x8xbf16>, vector<4x8x16xbf16>, vector<4x16x16xf32> -> vector<4x16x16xf32>
    "tpu.trace_stop"() : () -> ()
    %c0_15 = arith.constant 0 : index
    %c0_16 = arith.constant 0 : index
    %c0_17 = arith.constant 0 : index
    %19 = vector.load %arg7[%c0_15, %c0_16, %c0_17] : memref<4x8x16xbf16, #tpu.memory_space<vmem>>, vector<4x8x16xbf16>
    "tpu.trace_start"() <{level = 10 : i32, message = "hmd,hds->hms"}> : () -> ()
    %cst_18 = arith.constant dense<0.000000e+00> : vector<4x16x16xf32>
    %20 = tpu.matmul %14, %19, %cst_18 {dimension_numbers = #tpu.dot_dimension_numbers<[2], [1], [1], [2], [0, 0, 0, 1, 1, 2], [0], [0]>} : vector<4x16x8xbf16>, vector<4x8x16xbf16>, vector<4x16x16xf32> -> vector<4x16x16xf32>
    "tpu.trace_stop"() : () -> ()
    %21 = arith.truncf %16 : vector<4x8x16xf32> to vector<4x8x16xbf16>
    %22 = arith.truncf %18 : vector<4x16x16xf32> to vector<4x16x16xbf16>
    "tpu.trace_start"() <{level = 10 : i32, message = "hns,hms->hnm"}> : () -> ()
    %cst_19 = arith.constant dense<0.000000e+00> : vector<4x8x16xf32>
    %23 = tpu.matmul %21, %22, %cst_19 {dimension_numbers = #tpu.dot_dimension_numbers<[2], [2], [1], [1], [0, 0, 0, 1, 1, 1], [0], [0]>} : vector<4x8x16xbf16>, vector<4x16x16xbf16>, vector<4x8x16xf32> -> vector<4x8x16xf32>
    "tpu.trace_stop"() : () -> ()
    %cst_20 = arith.constant dense<0xFF800000> : vector<4x8xf32>
    %24 = vector.multi_reduction <maximumf>, %23, %cst_20 [2] : vector<4x8x16xf32> to vector<4x8xf32>
    %25 = vector.shape_cast %24 : vector<4x8xf32> to vector<4x8x1xf32>
    %26 = vector.broadcast %25 : vector<4x8x1xf32> to vector<4x8x16xf32>
    %27 = arith.subf %23, %26 : vector<4x8x16xf32>
    %28 = math.exp %27 : vector<4x8x16xf32>
    %cst_21 = arith.constant dense<0.000000e+00> : vector<4x8xf32>
    %29 = vector.multi_reduction <add>, %28, %cst_21 [2] : vector<4x8x16xf32> to vector<4x8xf32>
    %30 = vector.shape_cast %29 : vector<4x8xf32> to vector<4x8x1xf32>
    %31 = tpu.reciprocal %30 {approx = true} : vector<4x8x1xf32> -> vector<4x8x1xf32>
    %32 = arith.mulf %30, %31 : vector<4x8x1xf32>
    %cst_22 = arith.constant 2.000000e+00 : f32
    %33 = vector.broadcast %cst_22 : f32 to vector<4x8x1xf32>
    %34 = arith.subf %33, %32 : vector<4x8x1xf32>
    %35 = arith.mulf %31, %34 : vector<4x8x1xf32>
    %36 = vector.broadcast %35 : vector<4x8x1xf32> to vector<4x8x16xf32>
    %37 = arith.mulf %28, %36 : vector<4x8x16xf32>
    %38 = arith.truncf %37 : vector<4x8x16xf32> to vector<4x8x16xbf16>
    %39 = arith.truncf %20 : vector<4x16x16xf32> to vector<4x16x16xbf16>
    "tpu.trace_start"() <{level = 10 : i32, message = "hnm,hms->hns"}> : () -> ()
    %cst_23 = arith.constant dense<0.000000e+00> : vector<4x8x16xf32>
    %40 = tpu.matmul %38, %39, %cst_23 {dimension_numbers = #tpu.dot_dimension_numbers<[2], [1], [1], [2], [0, 0, 0, 1, 1, 2], [0], [0]>} : vector<4x8x16xbf16>, vector<4x16x16xbf16>, vector<4x8x16xf32> -> vector<4x8x16xf32>
    "tpu.trace_stop"() : () -> ()
    %41 = arith.truncf %40 : vector<4x8x16xf32> to vector<4x8x16xbf16>
    %c0_24 = arith.constant 0 : index
    %c0_25 = arith.constant 0 : index
    %c0_26 = arith.constant 0 : index
    %42 = vector.load %arg8[%c0_24, %c0_25, %c0_26] : memref<4x16x8xbf16, #tpu.memory_space<vmem>>, vector<4x16x8xbf16>
    "tpu.trace_start"() <{level = 10 : i32, message = "hns,hso->hno"}> : () -> ()
    %cst_27 = arith.constant dense<0.000000e+00> : vector<4x8x8xf32>
    %43 = tpu.matmul %41, %42, %cst_27 {dimension_numbers = #tpu.dot_dimension_numbers<[2], [1], [1], [2], [0, 0, 0, 1, 1, 2], [0], [0]>} : vector<4x8x16xbf16>, vector<4x16x8xbf16>, vector<4x8x8xf32> -> vector<4x8x8xf32>
    "tpu.trace_stop"() : () -> ()
    %cst_28 = arith.constant dense<0.000000e+00> : vector<8x8xf32>
    %44 = vector.multi_reduction <add>, %43, %cst_28 [0] : vector<4x8x8xf32> to vector<8x8xf32>
    %c0_29 = arith.constant 0 : index
    %c0_30 = arith.constant 0 : index
    %45 = vector.load %arg9[%c0_29, %c0_30] : memref<1x8xf32, #tpu.memory_space<vmem>>, vector<1x8xf32>
    %46 = vector.broadcast %45 : vector<1x8xf32> to vector<8x8xf32>
    %47 = arith.addf %44, %46 : vector<8x8xf32>
    %c0_31 = arith.constant 0 : index
    %c0_32 = arith.constant 0 : index
    %c0_33 = arith.constant 0 : index
    %48 = vector.load %arg10[%c0_31, %c0_32, %c0_33] : memref<1x8x8xf32, #tpu.memory_space<vmem>>, vector<1x8x8xf32>
    %49 = vector.shape_cast %48 : vector<1x8x8xf32> to vector<8x8xf32>
    %50 = vector.shape_cast %47 : vector<8x8xf32> to vector<1x8x8xf32>
    tpu.vector_store %arg10[%c0_31, %c0_32, %c0_33], %50 {strides = array<i32>} : memref<1x8x8xf32, #tpu.memory_space<vmem>>, vector<1x8x8xf32>,
    return
  }
  func.func @transform_0(%arg0: i32, %arg1: i32) -> (i32, i32, i32) {
    %c0_i32 = arith.constant 0 : i32
    %c0_i32_0 = arith.constant 0 : i32
    return %arg0, %arg1, %c0_i32 : i32, i32, i32
  }
  func.func @transform_1(%arg0: i32, %arg1: i32) -> (i32, i32, i32) {
    %c0_i32 = arith.constant 0 : i32
    %c0_i32_0 = arith.constant 0 : i32
    %c0_i32_1 = arith.constant 0 : i32
    return %arg0, %c0_i32, %c0_i32_0 : i32, i32, i32
  }
  func.func @transform_2(%arg0: i32, %arg1: i32) -> (i32, i32, i32) {
    %c0_i32 = arith.constant 0 : i32
    %c0_i32_0 = arith.constant 0 : i32
    %c0_i32_1 = arith.constant 0 : i32
    return %arg0, %c0_i32, %c0_i32_0 : i32, i32, i32
  }
  func.func @transform_3(%arg0: i32, %arg1: i32) -> (i32, i32, i32) {
    %c0_i32 = arith.constant 0 : i32
    %c0_i32_0 = arith.constant 0 : i32
    %c0_i32_1 = arith.constant 0 : i32
    %c0_i32_2 = arith.constant 0 : i32
    return %c0_i32, %c0_i32_0, %c0_i32_1 : i32, i32, i32
  }
  func.func @transform_4(%arg0: i32, %arg1: i32) -> (i32, i32, i32) {
    %c0_i32 = arith.constant 0 : i32
    %c0_i32_0 = arith.constant 0 : i32
    %c0_i32_1 = arith.constant 0 : i32
    %c0_i32_2 = arith.constant 0 : i32
    return %c0_i32, %c0_i32_0, %c0_i32_1 : i32, i32, i32
  }
  func.func @transform_5(%arg0: i32, %arg1: i32) -> (i32, i32, i32) {
    %c0_i32 = arith.constant 0 : i32
    %c0_i32_0 = arith.constant 0 : i32
    %c0_i32_1 = arith.constant 0 : i32
    %c0_i32_2 = arith.constant 0 : i32
    return %c0_i32, %c0_i32_0, %c0_i32_1 : i32, i32, i32
  }
  func.func @transform_6(%arg0: i32, %arg1: i32) -> (i32, i32, i32) {
    %c0_i32 = arith.constant 0 : i32
    %c0_i32_0 = arith.constant 0 : i32
    %c0_i32_1 = arith.constant 0 : i32
    %c0_i32_2 = arith.constant 0 : i32
    return %c0_i32, %c0_i32_0, %c0_i32_1 : i32, i32, i32
  }
  func.func @transform_7(%arg0: i32, %arg1: i32) -> (i32, i32) {
    %c0_i32 = arith.constant 0 : i32
    %c0_i32_0 = arith.constant 0 : i32
    %c0_i32_1 = arith.constant 0 : i32
    return %c0_i32, %c0_i32_0 : i32, i32
  }
  func.func @transform_8(%arg0: i32, %arg1: i32) -> (i32, i32, i32) {
    %c0_i32 = arith.constant 0 : i32
    %c0_i32_0 = arith.constant 0 : i32
    return %arg0, %arg1, %c0_i32 : i32, i32, i32
  }
}

</mosaic_0001>

<bundles_post_ra>
// kernel: tpu_custom_call.1
= control target key start
LH: loop header
LB: loop body
LE: loop exit
PB: predicated region body
PF: predicated region fallthrough
CT: control target
= control target key end

     0   :  { %13 = vsyncpa [#allocation3], 0  ;;  %s2454_s0 = inlined_call_operand.vmem [shape: bf16[2,8,8], index: 0, kind: input, shape index: {}]   ;;  %s2455_s1 = inlined_call_operand.vmem [shape: bf16[2,16,8], index: 1, kind: input, shape index: {}]   ;;  %s2456_s2 = inlined_call_operand.vmem [shape: bf16[2,16,8], index: 2, kind: input, shape index: {}]   ;;  %s2457_s3 = inlined_call_operand.vmem [shape: bf16[4,8,16], index: 3, kind: input, shape index: {}]   ;;  %s2458_s4 = inlined_call_operand.vmem [shape: bf16[4,8,16], index: 4, kind: input, shape index: {}]   ;;  %s2459_s5 = inlined_call_operand.vmem [shape: bf16[4,8,16], index: 5, kind: input, shape index: {}]   ;;  %s2460_s6 = inlined_call_operand.vmem [shape: bf16[4,16,8], index: 6, kind: input, shape index: {}]   ;;  %s2461_s7 = inlined_call_operand.vmem [shape: f32[1,8], index: 7, kind: input, shape index: {}]   ;;  %s2462_s8 = inlined_call_operand.hbm [shape: f32[2,8,8], index: 8, kind: output, shape index: {}]  }
   0x1   :  { %15 = vsyncpa [#allocation3 + $0x1], 0  ;;  %s2139_s27 = smov 0   ;;  %s2141_s28 = smov 0  }
   0x2   :  { %s2143_s29 = smov 0   ;;  %s2145_s30 = smov 0  }
   0x3   :  { %s2147_s9 = smov 0   ;;  %s2149_s10 = smov 0  }
   0x4 LB: > { %s1692_s11 = sadd.s32 4294967295, %s2089_s10   ;;  %s1693_s12 = sadd.s32 4294967294, %s2089_s10   ;;  %s2089_s10 = sphi %s2149_s10, %s21_s10   ;;  %s2085_s9 = sphi %s2147_s9, %s2469_s9   ;;  %s2081_s30 = sphi %s2145_s30, %s2468_s30   ;;  %s2077_s29 = sphi %s2143_s29, %s2467_s29   ;;  %s2073_s28 = sphi %s2141_s28, %s2466_s28   ;;  %s2069_s27 = sphi %s2139_s27, %s2465_s27  }
   0x5   : > { %s33_s13 = sadd.s32 1, %s2085_s9  ;;  %s227_s14 = sadd.s32 1, %s2077_s29 }
   0x6   : > { %p35_p0 = scmp.ge.s32.totalorder %s33_s13, 2  ;;  %p237_p1 = scmp.ne.s32.totalorder %s2077_s29, %s2073_s28 }
   0x7   : > { %p238_p2 = scmp.eq.s32.totalorder %s1692_s11, 1  ;;  %p243_p3 = scmp.ne.s32.totalorder %s2073_s28, %s2069_s27 }
   0x8   : > { %s2471_s13 = smov (%p35_p0, %s33_s13), 0  ;;  %p244_p5 = scmp.eq.s32.totalorder %s1693_s12, 1 }
   0x9   : > { %p2179_p4 = por %p238_p2, %p237_p1  ;;  %s222_s16 = ssub.s32 %s2085_s9, %s2471_s13 }
   0xa   : > { %p1696_p6 = scmp.ge.s32.totalorder %s2089_s10, 1  ;;  %p225_p7 = scmp.eq.s32.totalorder %s222_s16, 0 }
   0xb   : > { %p2186_p8 = por %p244_p5, %p243_p3  ;;  %p303_p9 = scmp.lt.s32.totalorder %s2089_s10, 3 }
   0xc   : > { %s2192_s18 = scalar_select %p225_p7, %s2077_s29, %s227_s14  }
   0xd   : > { %p304_p10 = pnand %p1696_p6, %p303_p9 }
   0xe   : > { %v372_v0 = vld [vmem:[%s2457_s3] sm:$0xf] (!%p304_p10)  ;;  %vm380_vm0 = vcmask (!%p304_p10), 1043456   ;;  %v373_v1 = vld [vmem:[%s2457_s3 + $0x4] sm:$0xf] (!%p304_p10)  ;;  %v2091_v2 = vmov (!%p304_p10), 0.0  }
   0xf   : > { %307 = sbr.rel (%p304_p10) target bundleno = 1258 (0x4ea), region = 52  ;;  %1788 = vmatprep.subr.bf16.mxu0 (!%p304_p10), %v2091_v2  ;;  %1794 = vmatprep.subr.bf16.mxu1 (!%p304_p10), %v2091_v2  ;;  %v382_v3 = vsel (!%p304_p10), %vm380_vm0, %v372_v0, 0  ;;  %v425_v4 = vsel (!%p304_p10), %vm380_vm0, %v373_v1, 0  ;;  %p349_p11 = scmp.lt.s32.totalorder (!%p304_p10), %s2081_s30, 1  ;;  %v374_v5 = vld [vmem:[%s2457_s3 + $0x8] sm:$0xf] (!%p304_p10) }
  0x10   : > { %1789 = vmatpush3.bf16.msra.mxu0 (!%p304_p10), %v382_v3  ;;  %1795 = vmatpush3.bf16.msra.mxu1 (!%p304_p10), %v425_v4  ;;  %v375_v6 = vld [vmem:[%s2457_s3 + $0xc] sm:$0xf] (!%p304_p10)  ;;  %vm2092_vm1 = vmmov (!%p304_p10), 0   ;;  %vm376_vm2 = vcmask (!%p304_p10), 64512   ;;  %v468_v7 = vsel (!%p304_p10), %vm380_vm0, %v374_v5, 0  ;;  %vm937_vm3 = vcmask (!%p304_p10), 130048  }
  0x11   : > { %1790 = vmatprep.mubr.msk.bf16.mxu0 (!%p304_p10), %vm2092_vm1, %v2091_v2  ;;  %1796 = vmatprep.mubr.msk.bf16.mxu1 (!%p304_p10), %vm2092_vm1, %v2091_v2  ;;  %v511_v8 = vsel (!%p304_p10), %vm380_vm0, %v375_v6, 0  ;;  %v553_v10 = vld [vmem:[%s2458_s4] sm:$0xf] (!%p304_p10)  ;;  %v554_v11 = vld [vmem:[%s2458_s4 + $0x4] sm:$0xf] (!%p304_p10)  ;;  %s1735_s19 = sshll.u32 (!%p304_p10), %s2081_s30, 7 }
  0x12   : > { %1800 = vmatprep.subr.bf16.mxu0 (!%p304_p10), %v2091_v2  ;;  %1806 = vmatprep.subr.bf16.mxu1 (!%p304_p10), %v2091_v2  ;;  %v566_v12 = vsel (!%p304_p10), %vm380_vm0, %v553_v10, 0  ;;  %v610_v13 = vsel (!%p304_p10), %vm380_vm0, %v554_v11, 0  ;;  %v555_v14 = vld [vmem:[%s2458_s4 + $0x8] sm:$0xf] (!%p304_p10)  ;;  %v556_v15 = vld [vmem:[%s2458_s4 + $0xc] sm:$0xf] (!%p304_p10)  ;;  %s2406_s24 = scalar_lea.hbm (!%p304_p10), %s2462_s8, %s1735_s19 }
  0x13   : > { %v654_v17 = vsel (!%p304_p10), %vm380_vm0, %v555_v14, 0  ;;  %v698_v18 = vsel (!%p304_p10), %vm380_vm0, %v556_v15, 0  ;;  %v741_v19 = vld [vmem:[%s2459_s5] sm:$0xf] (!%p304_p10)  ;;  %v742_v22 = vld [vmem:[%s2459_s5 + $0x4] sm:$0xf] (!%p304_p10) }
  0x14   : > { %v754_v21 = vsel (!%p304_p10), %vm380_vm0, %v741_v19, 0  ;;  %v798_v23 = vsel (!%p304_p10), %vm380_vm0, %v742_v22, 0  ;;  %v743_v24 = vld [vmem:[%s2459_s5 + $0x8] sm:$0xf] (!%p304_p10)  ;;  %v744_v25 = vld [vmem:[%s2459_s5 + $0xc] sm:$0xf] (!%p304_p10) }
  0x15   : > { %v842_v26 = vsel (!%p304_p10), %vm380_vm0, %v743_v24, 0  ;;  %v886_v27 = vsel (!%p304_p10), %vm380_vm0, %v744_v25, 0 }
  0x16   : > { %s350_s11 = scalar_select %p349_p11, %s2081_s30, 1 }
  0x18   : > { %s1698_s12 = sshll.u32 %s350_s11, 2  ;;  %s1738_s14 = sshll.u32 %s350_s11, 3 }
  0x19   : > { %s355_s20 = scalar_lea.vmem %s2454_s0, %s1698_s12  ;;  %s360_s23 = scalar_lea.vmem %s2455_s1, %s1738_s14 }
  0x1a   : > { %s2229_s26 = scalar_lea.vmem %s2456_s2, %s1738_s14  ;;  %v367_v9 = vld [vmem:[%s355_s20] sm:$0xf]  ;;  %s2093_s11 = smov [#allocation2]  }
  0x1b   : > { %1791 = vmatmul.mubr.msk.bf16.vlgmr.msra.gmra.mrb[0].mxu0 %vm376_vm2, %v367_v9  ;;  %1797 = vmatmul.mubr.msk.bf16.vlgmr.msra.gmra.mrb[0].mxu1 %vm376_vm2, %v367_v9  ;;  %v1989_v16 = vld [vmem:[%s360_s23] sm:$0xff]  }
  0x1c   : > { %1801 = vmatpush3.bf16.msra.mxu0 %v468_v7  ;;  %1807 = vmatpush3.bf16.msra.mxu1 %v511_v8  ;;  %v1990_v20 = vld [vmem:[%s2229_s26] sm:$0xff]   ;;  %s346_s26 = sand.u32 1, %s2073_s28  }
  0x1d   : > { %1802 = vmatprep.mubr.msk.bf16.mxu0 %vm2092_vm1, %v2091_v2  ;;  %1808 = vmatprep.mubr.msk.bf16.mxu1 %vm2092_vm1, %v2091_v2  ;;  %s1697_s12 = sshll.u32 %s346_s26, 3  ;;  %s1583_s25 = scalar_lea.sflag [#allocation3], %s346_s26 }
  0x1e   : > { %1812 = vmatprep.subr.bf16.mxu0 %v2091_v2  ;;  %1818 = vmatprep.subr.bf16.mxu1 %v2091_v2  ;;  %s348_s20 = scalar_lea.vmem [#allocation2], %s1697_s12  ;;  %s2015_s12 = sshll.u32 %s2093_s11, 4  ;;  %s2016_s12 = int_to_ptr.vmem [resolvable:$false] %s2015_s12 }
  0x1f   : > { %s1597_s21 = sshll.u32 %s348_s20, 4  ;;  %s2017_s14 = scalar_lea.vmem %s2016_s12, 256  ;;  %s2408_s21 = int_to_ptr.vmem [resolvable:$true] %s1597_s21 }
  0x20   : > { %s2011_s30 = scalar_lea.vmem %s2408_s21, 128  ;;  %p2018_p1 = scmp.lt.s32.totalorder %s2408_s21, %s2016_s12 }
  0x21   : > { %p2012_p12 = scmp.ne.s32.totalorder %s2408_s21, %s2011_s30  ;;  %p2019_p2 = scmp.lt.s32.totalorder %s2017_s14, %s2011_s30 }
  0x23   : > { %1803 = vmatmul.mubr.msk.bf16.vlgmr.msra.gmra.mrb[4].mxu0 %vm376_vm2, %v367_v9  ;;  %1809 = vmatmul.mubr.msk.bf16.vlgmr.msra.gmra.mrb[4].mxu1 %vm376_vm2, %v367_v9  ;;  %p2013_p13 = pnand %p2012_p12, %p2179_p4  ;;  %p2020_p3 = por %p2019_p2, %p2018_p1 }
  0x24   : > { %1813 = vmatpush3.bf16.msra.mxu0 %v566_v12  ;;  %1819 = vmatpush3.bf16.msra.mxu1 %v610_v13 }
  0x25   : > { %1814 = vmatprep.mubr.msk.bf16.mxu0 %vm2092_vm1, %v2091_v2  ;;  %1820 = vmatprep.mubr.msk.bf16.mxu1 %vm2092_vm1, %v2091_v2  ;;  %p2014_p0 = pneg %p2013_p13 }
  0x26   : > { %1824 = vmatprep.subr.bf16.mxu0 %v2091_v2  ;;  %1830 = vmatprep.subr.bf16.mxu1 %v2091_v2 }
  0x27   : > { %p2021_p5 = pnand %p2020_p3, %p2014_p0 }
  0x2b   : > { %1815 = vmatmul.mubr.msk.bf16.vlgmr.msra.gmra.mrb[8].mxu0 %vm376_vm2, %v1989_v16  ;;  %1821 = vmatmul.mubr.msk.bf16.vlgmr.msra.gmra.mrb[8].mxu1 %vm376_vm2, %v1989_v16 }
  0x2c   : > { %1825 = vmatpush3.bf16.msra.mxu0 %v654_v17  ;;  %1831 = vmatpush3.bf16.msra.mxu1 %v698_v18 }
  0x2d   : > { %1826 = vmatprep.mubr.msk.bf16.mxu0 %vm2092_vm1, %v2091_v2  ;;  %1832 = vmatprep.mubr.msk.bf16.mxu1 %vm2092_vm1, %v2091_v2 }
  0x2e   : > { %1836 = vmatprep.subr.bf16.mxu0 %v2091_v2  ;;  %1842 = vmatprep.subr.bf16.mxu1 %v2091_v2 }
  0x33   : > { %1827 = vmatmul.mubr.msk.bf16.vlgmr.msra.gmra.mrb[12].mxu0 %vm376_vm2, %v1989_v16  ;;  %1833 = vmatmul.mubr.msk.bf16.vlgmr.msra.gmra.mrb[12].mxu1 %vm376_vm2, %v1989_v16 }
  0x34   : > { %1838 = vmatprep.mubr.msk.bf16.mxu0 %vm2092_vm1, %v2091_v2  ;;  %1844 = vmatprep.mubr.msk.bf16.mxu1 %vm2092_vm1, %v2091_v2 }
  0x35   : > { %1837 = vmatpush3.bf16.msra.mxu0 %v754_v21  ;;  %1843 = vmatpush3.bf16.msra.mxu1 %v798_v23 }
  0x36   : > { %1848 = vmatprep.subr.bf16.mxu0 %v2091_v2  ;;  %1854 = vmatprep.subr.bf16.mxu1 %v2091_v2 }
  0x3b   : > { %1839 = vmatmul.mubr.msk.bf16.vlgmr.msra.gmra.mrb[16].mxu0 %vm376_vm2, %v1990_v20  ;;  %1845 = vmatmul.mubr.msk.bf16.vlgmr.msra.gmra.mrb[16].mxu1 %vm376_vm2, %v1990_v20 }
  0x3c   : > { %1850 = vmatprep.mubr.msk.bf16.mxu0 %vm2092_vm1, %v2091_v2  ;;  %1849 = vmatpush3.bf16.msra.mxu0 %v842_v26 }
  0x3d   : > { %1855 = vmatpush3.bf16.msra.mxu1 %v886_v27  ;;  %1856 = vmatprep.mubr.msk.bf16.mxu1 %vm2092_vm1, %v2091_v2 }
  0x3e   : > { %1860 = vmatprep.subr.bf16.mxu0 %v2091_v2  ;;  %1866 = vmatprep.subr.bf16.mxu1 %v2091_v2 }
  0x43   : > { %1851 = vmatmul.mubr.msk.bf16.vlgmr.msra.gmra.mrb[20].mxu0 %vm376_vm2, %v1990_v20  ;;  %1857 = vmatmul.mubr.msk.bf16.vlgmr.msra.gmra.mrb[20].mxu1 %vm376_vm2, %v1990_v20 }
  0x44   : > { %1862 = vmatprep.mubr.msk.bf16.mxu0 %vm2092_vm1, %v2091_v2  ;;  %1868 = vmatprep.mubr.msk.bf16.mxu1 %vm2092_vm1, %v2091_v2 }
  0xee   : > { %v418_v28 = vpop.f32.mrb[0].mxu0  ;;  %v461_v29 = vpop.f32.mrb[0].mxu1 }
  0xef   : > { %v1792_v30 = vpop.f32.mrb[1].mxu0  ;;  %v1798_v31 = vpop.f32.mrb[1].mxu1  ;;  %v929_v62 = vpack.c.bf16 %v418_v28, %v418_v28  ;;  %v930_v63 = vpack.c.bf16 %v461_v29, %v461_v29 }
  0xf0   : > { %v421_v32 = vpop.f32.mrb[2].mxu0  ;;  %v464_v33 = vpop.f32.mrb[2].mxu1 }
  0xf1   : > { %v1793_v34 = vpop.f32.mrb[3].mxu0  ;;  %v1799_v35 = vpop.f32.mrb[3].mxu1 }
  0xf6   : > { %v504_v36 = vpop.f32.mrb[4].mxu0  ;;  %v547_v37 = vpop.f32.mrb[4].mxu1 }
  0xf7   : > { %v1804_v38 = vpop.f32.mrb[5].mxu0  ;;  %v1810_v39 = vpop.f32.mrb[5].mxu1  ;;  %v931_v7 = vpack.c.bf16 %v504_v36, %v504_v36  ;;  %v932_v8 = vpack.c.bf16 %v547_v37, %v547_v37 }
  0xf8   : > { %v507_v40 = vpop.f32.mrb[6].mxu0  ;;  %v550_v41 = vpop.f32.mrb[6].mxu1 }
  0xf9   : > { %v1805_v42 = vpop.f32.mrb[7].mxu0  ;;  %v1811_v43 = vpop.f32.mrb[7].mxu1 }
  0xfe   : > { %v602_v44 = vpop.f32.mrb[8].mxu0  ;;  %v646_v45 = vpop.f32.mrb[8].mxu1 }
  0xff   : > { %v1816_v46 = vpop.f32.mrb[9].mxu0  ;;  %v1822_v47 = vpop.f32.mrb[9].mxu1 }
 0x100   : > { %v605_v48 = vpop.f32.mrb[10].mxu0  ;;  %v649_v49 = vpop.f32.mrb[10].mxu1 }
 0x101   : > { %v933_v50 = vpack.c.bf16 %v605_v48, %v602_v44  ;;  %v934_v51 = vpack.c.bf16 %v649_v49, %v646_v45  ;;  %v1817_v52 = vpop.f32.mrb[11].mxu0  ;;  %v1823_v53 = vpop.f32.mrb[11].mxu1 }
 0x103   : > { %v942_v54 = vsel %vm937_vm3, %v933_v50, 0  ;;  %v988_v55 = vsel %vm937_vm3, %v934_v51, 0 }
 0x104   : > { %1861 = vmatpush3.bf16.xpose.msra.mxu0 %v942_v54  ;;  %1867 = vmatpush3.bf16.xpose.msra.mxu1 %v988_v55 }
 0x105   : > { %1872 = vmatprep.subr.bf16.mxu0 %v2091_v2  ;;  %1878 = vmatprep.subr.bf16.mxu1 %v2091_v2 }
 0x106   : > { %v690_v56 = vpop.f32.mrb[12].mxu0  ;;  %v734_v57 = vpop.f32.mrb[12].mxu1 }
 0x107   : > { %v1828_v58 = vpop.f32.mrb[13].mxu0  ;;  %v1834_v59 = vpop.f32.mrb[13].mxu1 }
 0x108   : > { %v693_v60 = vpop.f32.mrb[14].mxu0  ;;  %v737_v61 = vpop.f32.mrb[14].mxu1 }
 0x109   : > { %v935_v0 = vpack.c.bf16 %v693_v60, %v690_v56  ;;  %v936_v1 = vpack.c.bf16 %v737_v61, %v734_v57  ;;  %v1829_v3 = vpop.f32.mrb[15].mxu0  ;;  %v1835_v4 = vpop.f32.mrb[15].mxu1 }
 0x10b   : > { %v1034_v5 = vsel %vm937_vm3, %v935_v0, 0  ;;  %v1080_v6 = vsel %vm937_vm3, %v936_v1, 0  ;;  %1863 = vmatmul.mubr.msk.bf16.vlgmr.msra.gmra.mrb[24].mxu0 %vm937_vm3, %v929_v62  ;;  %1869 = vmatmul.mubr.msk.bf16.vlgmr.msra.gmra.mrb[24].mxu1 %vm937_vm3, %v930_v63 }
 0x10c   : > { %1873 = vmatpush3.bf16.xpose.msra.mxu0 %v1034_v5  ;;  %1879 = vmatpush3.bf16.xpose.msra.mxu1 %v1080_v6 }
 0x10d   : > { %1874 = vmatprep.mubr.msk.bf16.mxu0 %vm2092_vm1, %v2091_v2  ;;  %1880 = vmatprep.mubr.msk.bf16.mxu1 %vm2092_vm1, %v2091_v2 }
 0x10e   : > { %1884 = vmatprep.subr.bf16.mxu0 %v2091_v2  ;;  %1890 = vmatprep.subr.bf16.mxu1 %v2091_v2  ;;  %v790_v9 = vpop.f32.mrb[16].mxu0  ;;  %v834_v14 = vpop.f32.mrb[16].mxu1 }
 0x10f   : > { %v1840_v10 = vpop.f32.mrb[17].mxu0  ;;  %v1846_v15 = vpop.f32.mrb[17].mxu1 }
 0x110   : > { %v793_v11 = vpop.f32.mrb[18].mxu0  ;;  %v837_v16 = vpop.f32.mrb[18].mxu1 }
 0x111   : > { %v1182_v12 = vpack.c.bf16 %v793_v11, %v790_v9  ;;  %v1841_v13 = vpop.f32.mrb[19].mxu0  ;;  %v1183_v17 = vpack.c.bf16 %v837_v16, %v834_v14  ;;  %v1847_v18 = vpop.f32.mrb[19].mxu1 }
 0x113   : > { %1875 = vmatmul.mubr.msk.bf16.vlgmr.msra.gmra.mrb[28].mxu0 %vm937_vm3, %v931_v7  ;;  %1881 = vmatmul.mubr.msk.bf16.vlgmr.msra.gmra.mrb[28].mxu1 %vm937_vm3, %v932_v8 }
 0x114   : > { %1886 = vmatprep.mubr.msk.bf16.mxu0 %vm2092_vm1, %v2091_v2  ;;  %1892 = vmatprep.mubr.msk.bf16.mxu1 %vm2092_vm1, %v2091_v2 }
 0x115   : > { %1885 = vmatpush3.bf16.msra.mxu0 %v1182_v12  ;;  %1891 = vmatpush3.bf16.msra.mxu1 %v1183_v17 }
 0x116   : > { %1896 = vmatprep.subr.bf16.mxu0 %v2091_v2  ;;  %v2331_v19 = vpop.f32.mrb[20].mxu0  ;;  %1902 = vmatprep.subr.bf16.mxu1 %v2091_v2  ;;  %v2338_v24 = vpop.f32.mrb[20].mxu1 }
 0x117   : > { %v1852_v20 = vpop.f32.mrb[21].mxu0  ;;  %v1858_v25 = vpop.f32.mrb[21].mxu1 }
 0x118   : > { %v2333_v21 = vpop.f32.mrb[22].mxu0  ;;  %v2340_v26 = vpop.f32.mrb[22].mxu1 }
 0x119   : > { %v1184_v22 = vpack.c.bf16 %v2333_v21, %v2331_v19  ;;  %v1853_v23 = vpop.f32.mrb[23].mxu0  ;;  %v1185_v27 = vpack.c.bf16 %v2340_v26, %v2338_v24  ;;  %v1859_v28 = vpop.f32.mrb[23].mxu1  ;;  %v1991_v19 = vld [vmem:[%s2460_s6] sm:$0xff]   ;;  %v1992_v26 = vld [vmem:[%s2460_s6 + $0x8] sm:$0xff]  }
 0x1de   : > { %v978_v29 = vpop.f32.mrb[24].mxu0  ;;  %v1024_v30 = vpop.f32.mrb[24].mxu1 }
 0x1df   : > { %v1864_v31 = vpop.f32.mrb[25].mxu0  ;;  %v1870_v32 = vpop.f32.mrb[25].mxu1  ;;  %v1122_v33 = vsel %vm937_vm3, %v978_v29, -inf  ;;  %v1125_v38 = vsel %vm937_vm3, %v1024_v30, -inf }
 0x1e0   : > { %v1027_v34 = vpop.f32.mrb[26].mxu1  ;;  %1123 = vmax.xlane.f32.xlu0 %v1122_v33  ;;  %v981_v35 = vpop.f32.mrb[26].mxu0 }
 0x1e1   : > { %v1865_v36 = vpop.f32.mrb[27].mxu0  ;;  %v1871_v37 = vpop.f32.mrb[27].mxu1 }
 0x1e2   : > { %v1993_v37 = vld [vmem:[%s2460_s6 + $0x10] sm:$0xff]  }
 0x1e4   : > { %1126 = vmax.xlane.f32.xlu0 %v1125_v38 }
 0x1e6   : > { %v1070_v39 = vpop.f32.mrb[28].mxu0  ;;  %v1116_v40 = vpop.f32.mrb[28].mxu1 }
 0x1e7   : > { %v1876_v41 = vpop.f32.mrb[29].mxu0  ;;  %v1882_v42 = vpop.f32.mrb[29].mxu1  ;;  %v1128_v43 = vsel %vm937_vm3, %v1070_v39, -inf  ;;  %v1131_v48 = vsel %vm937_vm3, %v1116_v40, -inf }
 0x1e8   : > { %v1119_v44 = vpop.f32.mrb[30].mxu1  ;;  %1129 = vmax.xlane.f32.xlu1 %v1128_v43  ;;  %v1073_v45 = vpop.f32.mrb[30].mxu0  ;;  %v1994_v43 = vld [vmem:[%s2460_s6 + $0x18] sm:$0xff]  }
 0x1e9   : > { %v1877_v46 = vpop.f32.mrb[31].mxu0  ;;  %v1883_v47 = vpop.f32.mrb[31].mxu1 }
 0x1ec   : > { %1132 = vmax.xlane.f32.xlu1 %v1131_v48 }
 0x26d   : > { %v1124_v49 = vpop.xlane.xlu0 %1123 }
 0x26e   : > { %v1134_v50 = vsub.f32 %v978_v29, %v1124_v49 }
 0x270   : > { %v1138_v51 = vmul.f32 1.442695, %v1134_v50 }
 0x271   : > { %v1127_v52 = vpop.xlane.xlu0 %1126 }
 0x272   : > { %1995 = vpow2.f32 %v1138_v51  ;;  %v1135_v53 = vsub.f32 %v1024_v30, %v1127_v52 }
 0x274   : > { %v1140_v54 = vmul.f32 1.442695, %v1135_v53 }
 0x275   : > { %v1130_v55 = vpop.xlane.xlu1 %1129 }
 0x276   : > { %1997 = vpow2.f32 %v1140_v54  ;;  %v1136_v56 = vsub.f32 %v1070_v39, %v1130_v55 }
 0x278   : > { %v1142_v57 = vmul.f32 1.442695, %v1136_v56 }
 0x279   : > { %v1133_v58 = vpop.xlane.xlu1 %1132 }
 0x27a   : > { %1999 = vpow2.f32 %v1142_v57  ;;  %v1137_v59 = vsub.f32 %v1116_v40, %v1133_v58 }
 0x27c   : > { %v1996_v60 = vpop.eup %1995  ;;  %v1144_v61 = vmul.f32 1.442695, %v1137_v59 }
 0x27d   : > { %v1146_v62 = vsel %vm937_vm3, %v1996_v60, 0.0 }
 0x27e   : > { %2001 = vpow2.f32 %v1144_v61  ;;  %1147 = vadd.xlane.f32.xlu0 %v1146_v62 }
 0x280   : > { %v1998_v63 = vpop.eup %1997 }
 0x281   : > { %v1149_v0 = vsel %vm937_vm3, %v1998_v63, 0.0 }
 0x282   : > { %1150 = vadd.xlane.f32.xlu1 %v1149_v0 }
 0x284   : > { %v2000_v1 = vpop.eup %1999 }
 0x285   : > { %v1152_v3 = vsel %vm937_vm3, %v2000_v1, 0.0 }
 0x286   : > { %1153 = vadd.xlane.f32.xlu0 %v1152_v3 }
 0x288   : > { %v2002_v4 = vpop.eup %2001 }
 0x289   : > { %v1155_v5 = vsel %vm937_vm3, %v2002_v4, 0.0 }
 0x28a   : > { %1156 = vadd.xlane.f32.xlu1 %v1155_v5 }
 0x30b   : > { %v1148_v6 = vpop.xlane.xlu0 %1147 }
 0x30c   : > { %2003 = vrcp.f32 %v1148_v6 }
 0x30f   : > { %v1151_v7 = vpop.xlane.xlu1 %1150 }
 0x310   : > { %2005 = vrcp.f32 %v1151_v7 }
 0x313   : > { %v1154_v8 = vpop.xlane.xlu0 %1153 }
 0x314   : > { %2007 = vrcp.f32 %v1154_v8 }
 0x316   : > { %v2004_v9 = vpop.eup %2003 }
 0x317   : > { %v1162_v10 = vmul.f32 %v2004_v9, %v1148_v6  ;;  %v1157_v11 = vpop.xlane.xlu1 %1156 }
 0x318   : > { %2009 = vrcp.f32 %v1157_v11 }
 0x319   : > { %v1166_v12 = vsub.f32 2.0, %v1162_v10 }
 0x31a   : > { %v2006_v13 = vpop.eup %2005 }
 0x31b   : > { %v1170_v14 = vmul.f32 %v2004_v9, %v1166_v12  ;;  %v1163_v15 = vmul.f32 %v2006_v13, %v1151_v7 }
 0x31d   : > { %v1174_v16 = vmul.f32 %v1996_v60, %v1170_v14  ;;  %v1167_v17 = vsub.f32 2.0, %v1163_v15 }
 0x31e   : > { %v2008_v18 = vpop.eup %2007 }
 0x31f   : > { %v1178_v20 = vpack.c.bf16 %v1174_v16, %v1174_v16  ;;  %v1171_v23 = vmul.f32 %v2006_v13, %v1167_v17  ;;  %v1164_v25 = vmul.f32 %v2008_v18, %v1154_v8  ;;  %v1733_v13 = vld [vmem:[%s2461_s7] ss:$0 sm:$0xff] }
 0x321   : > { %v1175_v28 = vmul.f32 %v1998_v63, %v1171_v23  ;;  %v1168_v29 = vsub.f32 2.0, %v1164_v25  ;;  %1887 = vmatmul.mubr.msk.bf16.vlgmr.msra.gmra.mrb[32].mxu0 %vm937_vm3, %v1178_v20 }
 0x322   : > { %v2010_v30 = vpop.eup %2009  ;;  %1897 = vmatpush3.bf16.msra.mxu0 %v1184_v22  ;;  %1898 = vmatprep.mubr.msk.bf16.mxu0 %vm2092_vm1, %v2091_v2 }
 0x323   : > { %v1179_v31 = vpack.c.bf16 %v1175_v28, %v1175_v28  ;;  %v1172_v32 = vmul.f32 %v2008_v18, %v1168_v29  ;;  %v1165_v33 = vmul.f32 %v2010_v30, %v1157_v11  ;;  %1908 = vmatprep.subr.bf16.mxu0 %v2091_v2 }
 0x325   : > { %v1176_v34 = vmul.f32 %v2000_v1, %v1172_v32  ;;  %v1169_v35 = vsub.f32 2.0, %v1165_v33  ;;  %1893 = vmatmul.mubr.msk.bf16.vlgmr.msra.gmra.mrb[32].mxu1 %vm937_vm3, %v1179_v31 }
 0x326   : > { %1903 = vmatpush3.bf16.msra.mxu1 %v1185_v27  ;;  %1904 = vmatprep.mubr.msk.bf16.mxu1 %vm2092_vm1, %v2091_v2 }
 0x327   : > { %v1180_v21 = vpack.c.bf16 %v1176_v34, %v1176_v34  ;;  %v1173_v22 = vmul.f32 %v2010_v30, %v1169_v35  ;;  %1914 = vmatprep.subr.bf16.mxu1 %v2091_v2 }
 0x329   : > { %v1177_v36 = vmul.f32 %v2002_v4, %v1173_v22  ;;  %1899 = vmatmul.mubr.msk.bf16.vlgmr.msra.gmra.mrb[36].mxu0 %vm937_vm3, %v1180_v21 }
 0x32a   : > { %1909 = vmatpush3.bf16.msra.mxu0 %v1991_v19  ;;  %1910 = vmatprep.mubr.msk.bf16.mxu0 %vm2092_vm1, %v2091_v2 }
 0x32b   : > { %v1181_v24 = vpack.c.bf16 %v1177_v36, %v1177_v36  ;;  %1920 = vmatprep.subr.bf16.mxu0 %v2091_v2 }
 0x32d   : > { %1905 = vmatmul.mubr.msk.bf16.vlgmr.msra.gmra.mrb[36].mxu1 %vm937_vm3, %v1181_v24 }
 0x32e   : > { %1916 = vmatprep.mubr.msk.bf16.mxu1 %vm2092_vm1, %v2091_v2  ;;  %1915 = vmatpush3.bf16.msra.mxu1 %v1992_v26 }
 0x32f   : > { %1926 = vmatprep.subr.bf16.mxu1 %v2091_v2 }
 0x3f4   : > { %v1223_v27 = vpop.f32.mrb[32].mxu0 }
 0x3f5   : > { %v1358_v38 = vpack.c.bf16 %v1223_v27, %v1223_v27  ;;  %v1888_v39 = vpop.f32.mrb[33].mxu0 }
 0x3f6   : > { %v1226_v40 = vpop.f32.mrb[34].mxu0 }
 0x3f7   : > { %v1889_v41 = vpop.f32.mrb[35].mxu0  ;;  %1911 = vmatmul.mubr.msk.bf16.vlgmr.msra.gmra.mrb[40].mxu0 %vm937_vm3, %v1358_v38 }
 0x3f8   : > { %v1266_v42 = vpop.f32.mrb[32].mxu1  ;;  %1921 = vmatpush3.bf16.msra.mxu0 %v1993_v37  ;;  %1922 = vmatprep.mubr.msk.bf16.mxu0 %vm2092_vm1, %v2091_v2 }
 0x3f9   : > { %v1359_v44 = vpack.c.bf16 %v1266_v42, %v1266_v42  ;;  %v1894_v45 = vpop.f32.mrb[33].mxu1 }
 0x3fa   : > { %v1269_v46 = vpop.f32.mrb[34].mxu1 }
 0x3fb   : > { %v1895_v47 = vpop.f32.mrb[35].mxu1  ;;  %1917 = vmatmul.mubr.msk.bf16.vlgmr.msra.gmra.mrb[40].mxu1 %vm937_vm3, %v1359_v44 }
 0x3fc   : > { %v1309_v48 = vpop.f32.mrb[36].mxu0  ;;  %1927 = vmatpush3.bf16.msra.mxu1 %v1994_v43  ;;  %1928 = vmatprep.mubr.msk.bf16.mxu1 %vm2092_vm1, %v2091_v2 }
 0x3fd   : > { %v1360_v49 = vpack.c.bf16 %v1309_v48, %v1309_v48  ;;  %v1900_v50 = vpop.f32.mrb[37].mxu0 }
 0x3fe   : > { %v1312_v51 = vpop.f32.mrb[38].mxu0 }
 0x3ff   : > { %v1901_v52 = vpop.f32.mrb[39].mxu0  ;;  %1923 = vmatmul.mubr.msk.bf16.vlgmr.msra.gmra.mrb[44].mxu0 %vm937_vm3, %v1360_v49 }
 0x400   : > { %v1352_v53 = vpop.f32.mrb[36].mxu1 }
 0x401   : > { %v1361_v54 = vpack.c.bf16 %v1352_v53, %v1352_v53  ;;  %v1906_v55 = vpop.f32.mrb[37].mxu1 }
 0x402   : > { %v1355_v56 = vpop.f32.mrb[38].mxu1 }
 0x403   : > { %v1907_v57 = vpop.f32.mrb[39].mxu1  ;;  %1929 = vmatmul.mubr.msk.bf16.vlgmr.msra.gmra.mrb[44].mxu1 %vm937_vm3, %v1361_v54 }
 0x4ca   : > { %v1413_v58 = vpop.f32.mrb[40].mxu0 }
 0x4cb   : > { %v1912_v59 = vpop.f32.mrb[41].mxu0  ;;  %v1566_v2 = vsel %vm376_vm2, %v1413_v58, 0.0 }
 0x4cc   : > { %v1416_v60 = vpop.f32.mrb[42].mxu0 }
 0x4cd   : > { %v1913_v61 = vpop.f32.mrb[43].mxu0 }
 0x4ce   : > { %v1462_v62 = vpop.f32.mrb[40].mxu1 }
 0x4cf   : > { %v1567_v63 = vsel %vm376_vm2, %v1462_v62, 0.0  ;;  %v1918_v0 = vpop.f32.mrb[41].mxu1 }
 0x4d0   : > { %v1568_v1 = vadd.f32 %v1567_v63, %v1566_v2  ;;  %v1465_v3 = vpop.f32.mrb[42].mxu1 }
 0x4d1   : > { %v1919_v4 = vpop.f32.mrb[43].mxu1 }
 0x4d2   : > { %v1511_v5 = vpop.f32.mrb[44].mxu0 }
 0x4d3   : > { %v1569_v6 = vsel %vm376_vm2, %v1511_v5, 0.0  ;;  %v1924_v7 = vpop.f32.mrb[45].mxu0 }
 0x4d4   : > { %v1570_v8 = vadd.f32 %v1569_v6, %v1568_v1  ;;  %v1514_v9 = vpop.f32.mrb[46].mxu0 }
 0x4d5   : > { %v1925_v10 = vpop.f32.mrb[47].mxu0 }
 0x4d6   : > { %v1560_v11 = vpop.f32.mrb[44].mxu1 }
 0x4d7   : > { %v1571_v12 = vsel %vm376_vm2, %v1560_v11, 0.0  ;;  %v1930_v14 = vpop.f32.mrb[45].mxu1 }
 0x4d8   : > { %v1572_v15 = vadd.f32 %v1571_v12, %v1570_v8  ;;  %v1563_v16 = vpop.f32.mrb[46].mxu1 }
 0x4d9   : > { %v1931_v17 = vpop.f32.mrb[47].mxu1 }
 0x4da   : > { %v1580_v18 = vadd.f32 %v1733_v13, %v1572_v15 }
 0x4dc   : > { %1581 = vst.msk [vmem:[%s348_s20] sm:$0xff] %vm376_vm2, %v1580_v18 }
 0x4dd   : > { %2024 = shalt.err (!%p2021_p5)
}
 0x4de   : > { %s2025_s26 = scalar_lea.hbm %s2406_s24, 128  ;;  %s2029_s20 = scalar_lea.hbm %s2462_s8, 256 }
 0x4df   : > { %p2026_p6 = scmp.ne.s32.totalorder %s2406_s24, %s2025_s26  ;;  %p2030_p10 = scmp.lt.u32.totalorder %s2406_s24, %s2462_s8 }
 0x4e0   : > { %p2031_p11 = scmp.lt.u32.totalorder %s2029_s20, %s2025_s26  ;;  %p2033_p13 = scmp.lt.u32.totalorder %s2025_s26, %s2406_s24 }
 0x4e1   : > { %p2027_p7 = pnand %p2026_p6, %p2179_p4 }
 0x4e2   : > { %p2032_p12 = por %p2031_p11, %p2030_p10 }
 0x4e3   : > { %p2028_p9 = pneg %p2027_p7 }
 0x4e4   : > { %p2034_p0 = por %p2033_p13, %p2032_p12 }
 0x4e6   : > { %p2035_p1 = pnand %p2034_p0, %p2028_p9 }
 0x4e8   : > { %2038 = shalt.err (!%p2035_p1)
}
 0x4e9   : > { %1932 = dma.vmem_to_hbm [thread:$0]  (%p2179_p4), %s2408_s21, 128, %s2406_s24, %s1583_s25  }
 0x4ea PF: > { %p1938_p2 = scmp.ge.s32.totalorder %s2089_s10, 2  ;;  %s1609_s30 = sand.u32 1, %s2069_s27  }
 0x4eb   : > { %s1610_s11 = scalar_lea.sflag [#allocation3], %s1609_s30 }
 0x4ec   : > { %p1935_p3 = pnand %p1938_p2, %p2186_p8 }
 0x4ee   : > { %2064 = dma.done.wait (!%p1935_p3), %s1610_s11, 128  }
 0x4ef   : > { %2066 = vsyncadd (!%p1935_p3), %s1610_s11, 4294967168  ;;  %s21_s10 = sadd.s32 1, %s2089_s10   ;;  %s2465_s27 = smov %s2073_s28 }
 0x4f0   : > { %p18_p5 = scmp.ge.s32.totalorder %s21_s10, 4   ;;  %s2466_s28 = smov %s2077_s29 }
 0x4f1   : > { %s2467_s29 = smov %s2192_s18  ;;  %s2468_s30 = smov %s2085_s9 }
 0x4f2   : > { %s2469_s9 = smov %s2471_s13  ;;  %20 = sbr.rel (!%p18_p5) target bundleno = 4 (0x4), region = 93 }
 0x4f9   :  { %1615 = vsyncpa [#allocation3], 1 }
 0x4fa   :  { %1617 = vsyncpa [#allocation3 + $0x1], 1 }

</bundles_post_ra>
